<compile_context>
chip_gen: v7x
topology: tpu7x:2x2x1
jax: 0.10.0
libtpu: 0.0.40
codegen_flags: <defaults>
</compile_context>

<pallas_src>
import jax
import jax.numpy as jnp
from jax.experimental import pallas as pl
from jax.experimental.pallas import tpu as pltpu


def mlp_kernel(x_ref, w1_ref, b1_ref, w2_ref, b2_ref, w3_ref, b3_ref,
               hidden_ref, out_ref):
    # Layer 1: (TB, D) @ (D, 64) on the MXU, f32 accumulation; bias+ReLU on VPU.
    h1 = jnp.dot(x_ref[...], w1_ref[...], preferred_element_type=jnp.float32)
    h1 = jnp.maximum(h1 + b1_ref[...], 0.0)

    # Layer 2: (TB, 64) @ (64, 32), f32 accumulation; bias+ReLU on VPU.
    h2 = jnp.dot(h1.astype(w2_ref.dtype), w2_ref[...],
                 preferred_element_type=jnp.float32)
    h2 = jnp.maximum(h2 + b2_ref[...], 0.0)                       # (TB, 32) f32
    hidden_ref[...] = h2                                          # hidden_rep

    # Layer 3 (N == 1): VPU multiply + 32-lane XLU reduction instead of an MXU
    # pass for a single output column.
    w3 = w3_ref[...].astype(jnp.float32)                          # (1, 32)
    out_ref[...] = jnp.sum(h2 * w3, axis=-1, keepdims=True) + b3_ref[...]


def _round_up(v, m):
    return ((v + m - 1) // m) * m


def fully_connected_nn_forward(x, params, *, compute_dtype=jnp.float32,
                               max_tile=4096):
    """x: (B, input_dim). Returns (output (B,1), hidden_rep (B,32)), both f32."""
    B, D = x.shape
    f32 = jnp.float32
    isz = jnp.dtype(compute_dtype).itemsize

    # ---- operands --------------------------------------------------------
    w1 = params["w1"].astype(compute_dtype)                       # (D, 64)
    b1 = params["b1"].astype(f32)                                 # (1, 64)
    w2 = params["w2"].astype(compute_dtype)                       # (64, 32)
    b2 = params["b2"].astype(f32)                                 # (1, 32)
    w3 = params["w3"].reshape(1, 32).astype(compute_dtype)        # (1, 32)
    b3 = params["b3"].reshape(1, 1).astype(f32)                   # (1, 1)

    # ---- batch tiling ----------------------------------------------------
    # Keep a single x tile <= ~8 MiB so double-buffering stays far under the
    # scoped VMEM limit even for wide input_dim.
    tile_cap = max(256, ((8 * 1024 * 1024) // max(D * isz, 1)) // 16 * 16)
    eff_max_tile = max(16, min(max_tile, tile_cap))

    B16 = _round_up(max(B, 1), 16)
    if B16 <= 16:
        ntiles = 1
    else:
        # >=2 tiles so ("parallel",) can shard across v7x's two TensorCores.
        ntiles = max(-(-B16 // eff_max_tile), 2)
    TB = _round_up(-(-B16 // ntiles), 16)
    ntiles = -(-B16 // TB)
    B_pad = ntiles * TB

    xp = x.astype(compute_dtype)
    if B_pad != B:
        xp = jnp.pad(xp, ((0, B_pad - B), (0, 0)))

    grid = (ntiles,)
    flops = 2 * B_pad * (D * 64 + 64 * 32 + 32)
    bytes_accessed = (B_pad * D * isz                       # x
                      + (D * 64 + 64 * 32 + 32) * isz       # weights
                      + (64 + 32 + 1) * 4                   # biases (f32)
                      + B_pad * 32 * 4                      # hidden_rep out
                      + B_pad * 1 * 4)                      # scalar out

    hidden_pad, out_pad = pl.pallas_call(
        mlp_kernel,
        out_shape=(jax.ShapeDtypeStruct((B_pad, 32), f32),
                   jax.ShapeDtypeStruct((B_pad, 1), f32)),
        grid_spec=pltpu.PrefetchScalarGridSpec(
            num_scalar_prefetch=0,
            grid=grid,
            in_specs=[
                pl.BlockSpec((TB, D), lambda i: (i, 0)),    # x: tiled over batch
                pl.BlockSpec((D, 64), lambda i: (0, 0)),    # w1 (VMEM resident)
                pl.BlockSpec((1, 64), lambda i: (0, 0)),    # b1
                pl.BlockSpec((64, 32), lambda i: (0, 0)),   # w2
                pl.BlockSpec((1, 32), lambda i: (0, 0)),    # b2
                pl.BlockSpec((1, 32), lambda i: (0, 0)),    # w3 row
                pl.BlockSpec((1, 1), lambda i: (0, 0)),     # b3
            ],
            out_specs=[
                pl.BlockSpec((TB, 32), lambda i: (i, 0)),   # hidden_rep
                pl.BlockSpec((TB, 1), lambda i: (i, 0)),    # output
            ],
        ),
        compiler_params=pltpu.CompilerParams(
            dimension_semantics=("parallel",),          # 2 TCs on v7x
            vmem_limit_bytes=32 * 1024 * 1024,
        ),
        cost_estimate=pl.CostEstimate(flops=flops, transcendentals=0,
                                      bytes_accessed=bytes_accessed),
    )(xp, w1, b1, w2, b2, w3, b3)

    return out_pad[:B], hidden_pad[:B]


def init_params(key, input_dim):
    """Deterministic init matching PyTorch Linear shapes (stored transposed)."""
    ks = jax.random.split(key, 6)

    def linear(kw, kb, fan_in, fan_out):
        bound = 1.0 / jnp.sqrt(fan_in)
        # PyTorch weight is (out, in); store (in, out) for y = x @ W + b.
        w = jax.random.uniform(kw, (fan_in, fan_out), jnp.float32, -bound, bound)
        b = jax.random.uniform(kb, (1, fan_out), jnp.float32, -bound, bound)
        return w, b

    w1, b1 = linear(ks[0], ks[1], input_dim, 64)
    w2, b2 = linear(ks[2], ks[3], 64, 32)
    w3, b3 = linear(ks[4], ks[5], 32, 1)
    return {"w1": w1, "b1": b1, "w2": w2, "b2": b2, "w3": w3, "b3": b3}


def reference_forward(x, p):
    h1 = jnp.maximum(x @ p["w1"] + p["b1"], 0.0)
    h2 = jnp.maximum(h1 @ p["w2"] + p["b2"], 0.0)
    return h2 @ p["w3"] + p["b3"], h2


if __name__ == "__main__":
    key = jax.random.PRNGKey(0)
    k_x, k_p = jax.random.split(key)

    input_dim = 32
    params = init_params(k_p, input_dim)

    # f32 path, small batch (single tile).
    x8 = jax.random.normal(k_x, (8, input_dim), dtype=jnp.float32)
    out, hidden = jax.block_until_ready(fully_connected_nn_forward(x8, params))
    ref_out, ref_hidden = reference_forward(x8, params)
    assert out.shape == (8, 1) and hidden.shape == (8, 32)
    assert jnp.allclose(out, ref_out, atol=1e-5, rtol=1e-5)
    assert jnp.allclose(hidden, ref_hidden, atol=1e-5, rtol=1e-5)

    # f32 path, batch not a multiple of 16 (exercises padding/slicing).
    x13 = jax.random.normal(k_x, (13, input_dim), dtype=jnp.float32)
    out13, hidden13 = jax.block_until_ready(
        fully_connected_nn_forward(x13, params))
    ref_out13, ref_hidden13 = reference_forward(x13, params)
    assert out13.shape == (13, 1) and hidden13.shape == (13, 32)
    assert jnp.allclose(out13, ref_out13, atol=1e-5, rtol=1e-5)
    assert jnp.allclose(hidden13, ref_hidden13, atol=1e-5, rtol=1e-5)

    # Multi-tile grid (>= 2 grid steps -> megacore path on v7x).
    x40 = jax.random.normal(k_x, (40, input_dim), dtype=jnp.float32)
    out40, hidden40 = jax.block_until_ready(
        fully_connected_nn_forward(x40, params))
    ref_out40, ref_hidden40 = reference_forward(x40, params)
    assert out40.shape == (40, 1) and hidden40.shape == (40, 32)
    assert jnp.allclose(out40, ref_out40, atol=1e-5, rtol=1e-5)
    assert jnp.allclose(hidden40, ref_hidden40, atol=1e-5, rtol=1e-5)

    # bf16 operand path (mem-bound win); looser tolerance (documented).
    out_bf, hidden_bf = jax.block_until_ready(
        fully_connected_nn_forward(x8, params, compute_dtype=jnp.bfloat16))
    assert jnp.allclose(out_bf, ref_out, atol=5e-2, rtol=5e-2)
    assert jnp.allclose(hidden_bf, ref_hidden, atol=5e-2, rtol=5e-2)

    print("KERNEL_OK")
</pallas_src>

<mosaic_0001>
module attributes {stable_mosaic.version = 11 : i64} {
  func.func @mlp_kernel(%arg0: i32, %arg1: memref<16x32xf32, #tpu.memory_space<vmem>>, %arg2: memref<32x64xf32, #tpu.memory_space<vmem>>, %arg3: memref<1x64xf32, #tpu.memory_space<vmem>>, %arg4: memref<64x32xf32, #tpu.memory_space<vmem>>, %arg5: memref<1x32xf32, #tpu.memory_space<vmem>>, %arg6: memref<1x32xf32, #tpu.memory_space<vmem>>, %arg7: memref<1x1xf32, #tpu.memory_space<vmem>>, %arg8: memref<16x32xf32, #tpu.memory_space<vmem>>, %arg9: memref<16x1xf32, #tpu.memory_space<vmem>>) attributes {dimension_semantics = [#tpu.dimension_semantics<parallel>], iteration_bounds = array<i64: 1>, scalar_prefetch = 0 : i64, scratch_operands = 0 : i64, tpu.core_type = #tpu.core_type<tc>, window_params = [{transform_indices = @transform_0, window_bounds = array<i64: 16, 32>}, {pipeline_mode = #tpu.pipeline_mode<synchronous>, transform_indices = @transform_1, window_bounds = array<i64: 32, 64>}, {pipeline_mode = #tpu.pipeline_mode<synchronous>, transform_indices = @transform_2, window_bounds = array<i64: 1, 64>}, {pipeline_mode = #tpu.pipeline_mode<synchronous>, transform_indices = @transform_3, window_bounds = array<i64: 64, 32>}, {pipeline_mode = #tpu.pipeline_mode<synchronous>, transform_indices = @transform_4, window_bounds = array<i64: 1, 32>}, {pipeline_mode = #tpu.pipeline_mode<synchronous>, transform_indices = @transform_5, window_bounds = array<i64: 1, 32>}, {pipeline_mode = #tpu.pipeline_mode<synchronous>, transform_indices = @transform_6, window_bounds = array<i64: 1, 1>}, {transform_indices = @transform_7, window_bounds = array<i64: 16, 32>}, {transform_indices = @transform_8, window_bounds = array<i64: 16, 1>}]} {
    %c0 = arith.constant 0 : index
    %c0_0 = arith.constant 0 : index
    %0 = vector.load %arg1[%c0, %c0_0] : memref<16x32xf32, #tpu.memory_space<vmem>>, vector<16x32xf32>
    %c0_1 = arith.constant 0 : index
    %c0_2 = arith.constant 0 : index
    %1 = vector.load %arg2[%c0_1, %c0_2] : memref<32x64xf32, #tpu.memory_space<vmem>>, vector<32x64xf32>
    %cst = arith.constant dense<0.000000e+00> : vector<16x64xf32>
    %2 = tpu.matmul %0, %1, %cst {dimension_numbers = #tpu.dot_dimension_numbers<[1], [0], [0], [1], [0, 0, 1, 1], [], []>} : vector<16x32xf32>, vector<32x64xf32>, vector<16x64xf32> -> vector<16x64xf32>
    %c0_3 = arith.constant 0 : index
    %c0_4 = arith.constant 0 : index
    %3 = vector.load %arg3[%c0_3, %c0_4] : memref<1x64xf32, #tpu.memory_space<vmem>>, vector<1x64xf32>
    %4 = vector.broadcast %3 : vector<1x64xf32> to vector<16x64xf32>
    %5 = arith.addf %2, %4 : vector<16x64xf32>
    %cst_5 = arith.constant 0.000000e+00 : f32
    %6 = vector.broadcast %cst_5 : f32 to vector<16x64xf32>
    %7 = arith.maximumf %5, %6 : vector<16x64xf32>
    %c0_6 = arith.constant 0 : index
    %c0_7 = arith.constant 0 : index
    %8 = vector.load %arg4[%c0_6, %c0_7] : memref<64x32xf32, #tpu.memory_space<vmem>>, vector<64x32xf32>
    %cst_8 = arith.constant dense<0.000000e+00> : vector<16x32xf32>
    %9 = tpu.matmul %7, %8, %cst_8 {dimension_numbers = #tpu.dot_dimension_numbers<[1], [0], [0], [1], [0, 0, 1, 1], [], []>} : vector<16x64xf32>, vector<64x32xf32>, vector<16x32xf32> -> vector<16x32xf32>
    %c0_9 = arith.constant 0 : index
    %c0_10 = arith.constant 0 : index
    %10 = vector.load %arg5[%c0_9, %c0_10] : memref<1x32xf32, #tpu.memory_space<vmem>>, vector<1x32xf32>
    %11 = vector.broadcast %10 : vector<1x32xf32> to vector<16x32xf32>
    %12 = arith.addf %9, %11 : vector<16x32xf32>
    %cst_11 = arith.constant 0.000000e+00 : f32
    %13 = vector.broadcast %cst_11 : f32 to vector<16x32xf32>
    %14 = arith.maximumf %12, %13 : vector<16x32xf32>
    %c0_12 = arith.constant 0 : index
    %c0_13 = arith.constant 0 : index
    %15 = vector.load %arg8[%c0_12, %c0_13] : memref<16x32xf32, #tpu.memory_space<vmem>>, vector<16x32xf32>
    tpu.vector_store %arg8[%c0_12, %c0_13], %14 {strides = array<i32>} : memref<16x32xf32, #tpu.memory_space<vmem>>, vector<16x32xf32>,
    %c0_14 = arith.constant 0 : index
    %c0_15 = arith.constant 0 : index
    %16 = vector.load %arg6[%c0_14, %c0_15] : memref<1x32xf32, #tpu.memory_space<vmem>>, vector<1x32xf32>
    %17 = vector.broadcast %16 : vector<1x32xf32> to vector<16x32xf32>
    %18 = arith.mulf %14, %17 : vector<16x32xf32>
    %cst_16 = arith.constant dense<0.000000e+00> : vector<16xf32>
    %19 = vector.multi_reduction <add>, %18, %cst_16 [1] : vector<16x32xf32> to vector<16xf32>
    %20 = vector.shape_cast %19 : vector<16xf32> to vector<16x1xf32>
    %c0_17 = arith.constant 0 : index
    %c0_18 = arith.constant 0 : index
    %21 = vector.load %arg7[%c0_17, %c0_18] : memref<1x1xf32, #tpu.memory_space<vmem>>, vector<1x1xf32>
    %22 = vector.broadcast %21 : vector<1x1xf32> to vector<16x1xf32>
    %23 = arith.addf %20, %22 : vector<16x1xf32>
    %c0_19 = arith.constant 0 : index
    %c0_20 = arith.constant 0 : index
    %24 = vector.load %arg9[%c0_19, %c0_20] : memref<16x1xf32, #tpu.memory_space<vmem>>, vector<16x1xf32>
    tpu.vector_store %arg9[%c0_19, %c0_20], %23 {strides = array<i32>} : memref<16x1xf32, #tpu.memory_space<vmem>>, vector<16x1xf32>,
    return
  }
  func.func @transform_0(%arg0: i32) -> (i32, i32) {
    %c0_i32 = arith.constant 0 : i32
    %c0_i32_0 = arith.constant 0 : i32
    return %arg0, %c0_i32 : i32, i32
  }
  func.func @transform_1(%arg0: i32) -> (i32, i32) {
    %c0_i32 = arith.constant 0 : i32
    %c0_i32_0 = arith.constant 0 : i32
    %c0_i32_1 = arith.constant 0 : i32
    return %c0_i32, %c0_i32_0 : i32, i32
  }
  func.func @transform_2(%arg0: i32) -> (i32, i32) {
    %c0_i32 = arith.constant 0 : i32
    %c0_i32_0 = arith.constant 0 : i32
    %c0_i32_1 = arith.constant 0 : i32
    return %c0_i32, %c0_i32_0 : i32, i32
  }
  func.func @transform_3(%arg0: i32) -> (i32, i32) {
    %c0_i32 = arith.constant 0 : i32
    %c0_i32_0 = arith.constant 0 : i32
    %c0_i32_1 = arith.constant 0 : i32
    return %c0_i32, %c0_i32_0 : i32, i32
  }
  func.func @transform_4(%arg0: i32) -> (i32, i32) {
    %c0_i32 = arith.constant 0 : i32
    %c0_i32_0 = arith.constant 0 : i32
    %c0_i32_1 = arith.constant 0 : i32
    return %c0_i32, %c0_i32_0 : i32, i32
  }
  func.func @transform_5(%arg0: i32) -> (i32, i32) {
    %c0_i32 = arith.constant 0 : i32
    %c0_i32_0 = arith.constant 0 : i32
    %c0_i32_1 = arith.constant 0 : i32
    return %c0_i32, %c0_i32_0 : i32, i32
  }
  func.func @transform_6(%arg0: i32) -> (i32, i32) {
    %c0_i32 = arith.constant 0 : i32
    %c0_i32_0 = arith.constant 0 : i32
    %c0_i32_1 = arith.constant 0 : i32
    return %c0_i32, %c0_i32_0 : i32, i32
  }
  func.func @transform_7(%arg0: i32) -> (i32, i32) {
    %c0_i32 = arith.constant 0 : i32
    %c0_i32_0 = arith.constant 0 : i32
    return %arg0, %c0_i32 : i32, i32
  }
  func.func @transform_8(%arg0: i32) -> (i32, i32) {
    %c0_i32 = arith.constant 0 : i32
    %c0_i32_0 = arith.constant 0 : i32
    return %arg0, %c0_i32 : i32, i32
  }
}

</mosaic_0001>

<bundles_post_ra>
// kernel: tpu_custom_call.1
= control target key start
LH: loop header
LB: loop body
LE: loop exit
PB: predicated region body
PF: predicated region fallthrough
CT: control target
= control target key end

     0   :  { %s507_s0 = inlined_call_operand.vmem [shape: f32[16,32], index: 0, kind: input, shape index: {}]   ;;  %s508_s1 = inlined_call_operand.vmem [shape: f32[32,64], index: 1, kind: input, shape index: {}]   ;;  %s509_s2 = inlined_call_operand.vmem [shape: f32[1,64], index: 2, kind: input, shape index: {}]   ;;  %s510_s3 = inlined_call_operand.vmem [shape: f32[64,32], index: 3, kind: input, shape index: {}]   ;;  %s511_s4 = inlined_call_operand.vmem [shape: f32[1,32], index: 4, kind: input, shape index: {}]   ;;  %s512_s5 = inlined_call_operand.vmem [shape: f32[1,32], index: 5, kind: input, shape index: {}]   ;;  %s513_s6 = inlined_call_operand.<no memory space> [shape: f32[1,1], index: 6, kind: input, shape index: {}]   ;;  %s514_s7 = inlined_call_operand.hbm [shape: f32[16,32], index: 7, kind: output, shape index: {0}]   ;;  %s515_s8 = inlined_call_operand.vmem [shape: f32[16,1], index: 8, kind: output, shape index: {1}]  }
   0x1   :  { %v14_v0 = vstv %s513_s6 }
   0x2   :  { %15 = vst [vmem:[#allocation2] sm:$0x1] %v14_v0 }
   0x3   :  { %v33_v1 = vld [vmem:[%s508_s1] sm:$0xff]  ;;  %v34_v2 = vld [vmem:[%s508_s1 + $0x8] sm:$0xff]  ;;  %v35_v3 = vld [vmem:[%s508_s1 + $0x10] sm:$0xff]  ;;  %vm44_vm0 = vcmask 261120  }
   0x4   :  { %v330_v4 = vpack.c.bf16 %v34_v2, %v33_v1  ;;  %v36_v5 = vld [vmem:[%s508_s1 + $0x18] sm:$0xff]  ;;  %v31_v6 = vld [vmem:[%s507_s0] sm:$0xff]  ;;  %v129_v9 = vld [vmem:[%s510_s3 + $0x8] sm:$0xff] }
   0x5   :  { %v334_v7 = vpack.c.bf16 %v36_v5, %v35_v3  ;;  %308 = vmatprep.mubr.msk.f32.mxu0 %vm44_vm0, %v31_v6  ;;  %v128_v8 = vld [vmem:[%s510_s3] sm:$0xff]  ;;  %v130_v10 = vld [vmem:[%s510_s3 + $0x10] sm:$0xff]  ;;  %v131_v12 = vld [vmem:[%s510_s3 + $0x18] sm:$0xff] }
   0x6   :  { %331 = vmatprep.subr.bf16.mxu0 %v330_v4  ;;  %v338_v11 = vpack.c.bf16 %v129_v9, %v128_v8  ;;  %v342_v13 = vpack.c.bf16 %v131_v12, %v130_v10  ;;  %v132_v14 = vld [vmem:[%s510_s3 + $0x20] sm:$0xff]  ;;  %v133_v15 = vld [vmem:[%s510_s3 + $0x28] sm:$0xff] }
   0x7   :  { %333 = vmatpush3.bf16.msra.mxu0 %v330_v4 }
   0x8   :  { %16 = vsyncpa [#allocation4], 0  ;;  %335 = vmatprep.subr.bf16.mxu0 %v334_v7  ;;  %339 = vmatprep.subr.bf16.mxu1 %v338_v11  ;;  %v346_v16 = vpack.c.bf16 %v133_v15, %v132_v14  ;;  %v32_v17 = vld [vmem:[%s507_s0 + $0x8] sm:$0xff]  ;;  %v134_v18 = vld [vmem:[%s510_s3 + $0x30] sm:$0xff]  ;;  %vm143_vm1 = vcmask 523264  }
   0x9   :  { %341 = vmatpush3.bf16.msra.mxu1 %v338_v11  ;;  %v135_v19 = vld [vmem:[%s510_s3 + $0x38] sm:$0xff]  ;;  %v276_v21 = vld [vmem:[%s509_s2] ss:$0 sm:$0xff] }
   0xa   :  { %343 = vmatprep.subr.bf16.mxu1 %v342_v13  ;;  %v350_v20 = vpack.c.bf16 %v135_v19, %v134_v18  ;;  %v279_v28 = vld [vmem:[%s511_s4] ss:$0 sm:$0xff]  ;;  %s381_s4 = smov [#allocation3]  }
   0xb   :  { %337 = vmatpush3.bf16.msra.mxu0 %v334_v7  ;;  %v282_v34 = vld [vmem:[%s512_s5] ss:$0 sm:$0xff]  ;;  %s261_s14 = sshll.u32 %s381_s4, 4  ;;  %s262_s14 = int_to_ptr.vmem [resolvable:$true] %s261_s14 }
   0xc   :  { %s357_s6 = scalar_lea.vmem %s262_s14, 256  ;;  %p362_p1 = scmp.lt.s32.totalorder %s262_s14, %s262_s14 }
   0xd   :  { %345 = vmatpush3.bf16.msra.mxu1 %v342_v13  ;;  %p358_p0 = scmp.ne.s32.totalorder %s262_s14, %s357_s6  ;;  %p363_p2 = scmp.lt.s32.totalorder %s357_s6, %s357_s6 }
   0xe   :  { %309 = vmatmul.mubr.msk.f32.vlgmr.msra.gmra.mrb[0].mxu0 %vm44_vm0, %v32_v17  ;;  %347 = vmatprep.subr.bf16.mxu1 %v346_v16 }
   0xf   :  { %p364_p3 = por %p363_p2, %p362_p1 }
  0x11   :  { %349 = vmatpush3.bf16.msra.mxu1 %v346_v16  ;;  %p365_p4 = pnand %p364_p3, %p358_p0 }
  0x12   :  { %351 = vmatprep.subr.bf16.mxu1 %v350_v20 }
  0x15   :  { %353 = vmatpush3.bf16.msra.mxu1 %v350_v20 }
  0xe1   :  { %v310_v22 = vpop.f32.mrb[0].mxu0 }
  0xe2   :  { %v123_v23 = vadd.f32 %v310_v22, %v276_v21  ;;  %v117_v24 = vpop.f32.mrb[1].mxu0 }
  0xe3   :  { %v118_v25 = vadd.f32 %v276_v21, %v117_v24 }
  0xe4   :  { %v127_v27 = vmax.f32 %v123_v23, 0.0 }
  0xe5   :  { %v126_v26 = vmax.f32 %v118_v25, 0.0 }
  0xe7   :  { %327 = vmatprep.mubr.msk.f32.mxu1 %vm143_vm1, %v126_v26 }
  0xe8   :  { %328 = vmatmul.mubr.msk.f32.vlgmr.msra.gmra.mrb[0].mxu1 %vm143_vm1, %v127_v27 }
 0x1bb   :  { %v329_v29 = vpop.f32.mrb[0].mxu1 }
 0x1bc   :  { %v222_v30 = vadd.f32 %v329_v29, %v279_v28  ;;  %v216_v31 = vpop.f32.mrb[1].mxu1 }
 0x1bd   :  { %v217_v32 = vadd.f32 %v279_v28, %v216_v31 }
 0x1be   :  { %v226_v33 = vmax.f32 %v222_v30, 0.0 }
 0x1bf   :  { %v225_v35 = vmax.f32 %v217_v32, 0.0 }
 0x1c0   :  { %228 = vst.msk [vmem:[#allocation3 + $0x8] sm:$0xff] %vm44_vm0, %v226_v33  ;;  %v237_v38 = vmul.f32 %v282_v34, %v226_v33 }
 0x1c1   :  { %227 = vst.msk [vmem:[#allocation3] sm:$0xff] %vm44_vm0, %v225_v35  ;;  %v236_v36 = vmul.f32 %v282_v34, %v225_v35 }
 0x1c2   :  { %v241_v39 = vsel %vm44_vm0, %v237_v38, 0.0 }
 0x1c3   :  { %v238_v37 = vsel %vm44_vm0, %v236_v36, 0.0 }
 0x1c4   :  { %239 = vadd.xlane.f32.xlu0 %v238_v37 }
 0x1c8   :  { %242 = vadd.xlane.f32.xlu0 %v241_v39 }
 0x1c9   :  { %368 = shalt.err (!%p365_p4)
}
 0x1ca   :  { %s369_s16 = scalar_lea.hbm %s514_s7, 256 }
 0x1cb   :  { %p370_p5 = scmp.ne.s32.totalorder %s514_s7, %s369_s16  ;;  %p373_p6 = scmp.lt.u32.totalorder %s369_s16, %s514_s7 }
 0x1cd   :  { %p375_p7 = pnand %p373_p6, %p370_p5 }
 0x1cf   :  { %378 = shalt.err (!%p375_p7)
}
 0x1d0   :  { %s382_s21 = smov 128   ;;  %s383_s1 = smov 8   ;;  %v283_v40 = vld [vmem:[#allocation2] ss:$0 sm:$0xff]  ;;  %vm253_vm2 = vcmask 7168  }
 0x1d1   :  { %267 = dma.vmem_to_hbm [thread:$0]  %s262_s14, 256, %s514_s7, [#allocation4], %s382_s21, %s382_s21, %s383_s1  }
 0x251   :  { %v240_v41 = vpop.xlane.xlu0 %239 }
 0x252   :  { %v251_v42 = vadd.f32 %v283_v40, %v240_v41 }
 0x254   :  { %254 = vst.msk [vmem:[%s515_s8] sm:$0xff] %vm253_vm2, %v251_v42 }
 0x255   :  { %v243_v43 = vpop.xlane.xlu0 %242 }
 0x256   :  { %v252_v44 = vadd.f32 %v283_v40, %v243_v43 }
 0x258   :  { %255 = vst.msk [vmem:[%s515_s8 + $0x8] sm:$0xff] %vm253_vm2, %v252_v44 }
 0x259   :  { %379 = dma.done.wait [#allocation4], 256  }
 0x25a   :  { %380 = vsyncadd [#allocation4], 4294967040 }
 0x25b   :  { %275 = vsyncpa [#allocation4], 1 }

</bundles_post_ra>
